<compile_context>
chip_gen: v7x
topology: tpu7x:2x2x1
jax: 0.10.0
libtpu: 0.0.40
codegen_flags: <defaults>
</compile_context>

<pallas_src>
import jax
import jax.numpy as jnp
from jax.experimental import pallas as pl
from jax.experimental.pallas import tpu as pltpu


def _leaky_relu(x, negative_slope=0.2):
    # max(x, a*x) == LeakyReLU(a) for 0 < a < 1 (single VPU mul+max)
    return jnp.maximum(x, negative_slope * x)


def naive_encoder_kernel(x_ref, w1_ref, b1_ref, w2_ref, b2_ref,
                         wh_ref, bh_ref, out_ref):
    """One batch tile: (TILE_B, in_pad) bf16 -> (TILE_B, out_pad) f32."""
    x = x_ref[...]                                   # bf16 operands
    # FC_input + LeakyReLU  (f32 accumulate, f32 bias/activation math)
    h = _leaky_relu(
        jnp.dot(x, w1_ref[...], preferred_element_type=jnp.float32) + b1_ref[...])

    # FC_input2 applied three times (shared weights), each followed by LeakyReLU
    w2 = w2_ref[...]
    b2 = b2_ref[...]
    for _ in range(3):
        h = _leaky_relu(
            jnp.dot(h.astype(jnp.bfloat16), w2,
                    preferred_element_type=jnp.float32) + b2)

    # Fused heads [Wm | Wv]: one matmul, one lane-dense full-block store.
    out = (jnp.dot(h.astype(jnp.bfloat16), wh_ref[...],
                   preferred_element_type=jnp.float32) + bh_ref[...])
    out_ref[...] = out.astype(out_ref.dtype)


def _round_up(n, m):
    return ((n + m - 1) // m) * m


def _pad2(a, rows, cols):
    return jnp.pad(a, ((0, rows - a.shape[0]), (0, cols - a.shape[1])))


def naive_encoder(x, params, *, tile_b=512):
    """NaiveEncoder forward pass with a batch-tiled Pallas kernel.

    x: (batch, input_dim) float32
    params: dict with pre-transposed weights (in, out) and biases (1, out)
    returns: (batch, 2*latent_dim) float32 = concat([mean, log_var], -1)
    """
    batch, input_dim = x.shape
    hidden_dim = params["w1"].shape[1]
    latent_dim = params["wm"].shape[1]
    out_dim = 2 * latent_dim

    # ---- pad every contraction / lane dim to a multiple of 128 (exact: zeros
    #      stay zero through LeakyReLU and contribute 0 to every dot) ----
    in_pad = _round_up(input_dim, 128)
    h_pad = _round_up(hidden_dim, 128)
    out_pad = _round_up(out_dim, 128)     # lane-dense output block

    # bf16 matmul operands, f32 biases (bias-add + LeakyReLU stay f32).
    w1 = _pad2(params["w1"], in_pad, h_pad).astype(jnp.bfloat16)
    b1 = _pad2(params["b1"], 1, h_pad)
    w2 = _pad2(params["w2"], h_pad, h_pad).astype(jnp.bfloat16)
    b2 = _pad2(params["b2"], 1, h_pad)
    wh = _pad2(jnp.concatenate([params["wm"], params["wv"]], axis=1),
               h_pad, out_pad).astype(jnp.bfloat16)
    bh = _pad2(jnp.concatenate([params["bm"], params["bv"]], axis=1), 1, out_pad)

    # ---- batch tiling: pad only to a multiple of 8; pick an even number of
    #      grid steps (>=2 when batch allows) so v7x megacore uses both TCs ----
    b8 = _round_up(batch, 8)
    n_tiles = max(pl.cdiv(b8, tile_b), 1)
    if b8 >= 16:
        n_tiles = max(n_tiles, 2)
    if n_tiles > 1 and n_tiles % 2:
        n_tiles += 1
    tile = _round_up(pl.cdiv(b8, n_tiles), 8)
    b_pad = tile * n_tiles

    xp = jnp.pad(x, ((0, b_pad - batch), (0, in_pad - input_dim))).astype(jnp.bfloat16)
    grid = (n_tiles,)

    # ---- VMEM budget (cap at 64 MiB so it also fits a v7x TensorCore) ----
    weight_vmem = (w1.size + w2.size + wh.size) * 2 + (b1.size + b2.size + bh.size) * 4
    io_vmem = 2 * tile * in_pad * 2 + 2 * tile * out_pad * 4   # double-buffered x / out tiles
    act_vmem = 6 * tile * h_pad * 4                            # f32 intermediates headroom
    vmem_limit = int(min(max(2 * (weight_vmem + io_vmem + act_vmem), 32 * 2**20),
                         64 * 2**20))

    flops = 2 * b_pad * (in_pad * h_pad + 3 * h_pad * h_pad + h_pad * out_pad)
    bytes_accessed = (xp.size * 2 + b_pad * out_pad * 4 + weight_vmem)

    rows = lambda i: (i, 0)        # x / out: march down the batch
    const = lambda i: (0, 0)       # weights: same block every step -> stay resident

    def _run(single_buffer_weights):
        if single_buffer_weights:
            wspec = lambda shape: pl.BlockSpec(shape, const,
                                               pipeline_mode=pl.Buffered(1))
        else:
            wspec = lambda shape: pl.BlockSpec(shape, const)

        return pl.pallas_call(
            naive_encoder_kernel,
            out_shape=jax.ShapeDtypeStruct((b_pad, out_pad), jnp.float32),
            grid=grid,
            in_specs=[
                pl.BlockSpec((tile, in_pad), rows),   # x  (double-buffered)
                wspec((in_pad, h_pad)),               # W1
                wspec((1, h_pad)),                    # b1
                wspec((h_pad, h_pad)),                # W2
                wspec((1, h_pad)),                    # b2
                wspec((h_pad, out_pad)),              # [Wm | Wv]
                wspec((1, out_pad)),                  # [bm | bv]
            ],
            out_specs=pl.BlockSpec((tile, out_pad), rows),
            compiler_params=pltpu.CompilerParams(
                dimension_semantics=("parallel",),    # megacore sharding (v7x)
                vmem_limit_bytes=vmem_limit),
            cost_estimate=pl.CostEstimate(
                flops=flops, transcendentals=0, bytes_accessed=bytes_accessed),
        )(xp, w1, b1, w2, b2, wh, bh)

    try:
        # Single-buffer the never-refetched weights (halves resident-weight VMEM).
        out = _run(single_buffer_weights=True)
    except Exception:
        # Fallback if this JAX build rejects pipeline_mode=pl.Buffered(1).
        out = _run(single_buffer_weights=False)

    return out[:batch, :out_dim]


def init_params(key, input_dim, hidden_dim, latent_dim):
    """Deterministic synthetic parameters matching nn.Linear shapes, stored
    pre-transposed as (in_features, out_features); biases as (1, out)."""
    ks = jax.random.split(key, 8)
    scale = 0.1

    def lin(kw, kb, fin, fout):
        w = scale * jax.random.normal(kw, (fin, fout), dtype=jnp.float32)
        b = scale * jax.random.normal(kb, (fout,), dtype=jnp.float32)
        return w, b.reshape(1, fout)

    w1, b1 = lin(ks[0], ks[1], input_dim, hidden_dim)
    w2, b2 = lin(ks[2], ks[3], hidden_dim, hidden_dim)
    wm, bm = lin(ks[4], ks[5], hidden_dim, latent_dim)
    wv, bv = lin(ks[6], ks[7], hidden_dim, latent_dim)
    return {"w1": w1, "b1": b1, "w2": w2, "b2": b2,
            "wm": wm, "bm": bm, "wv": wv, "bv": bv}


def reference_forward_f32(x, p):
    """Pure-JAX reference with exact PyTorch-f32 semantics."""
    lrelu = lambda v: jnp.where(v >= 0, v, 0.2 * v)
    h = lrelu(x @ p["w1"] + p["b1"])
    h = lrelu(h @ p["w2"] + p["b2"])
    h = lrelu(h @ p["w2"] + p["b2"])
    h = lrelu(h @ p["w2"] + p["b2"])
    mean = h @ p["wm"] + p["bm"]
    log_var = h @ p["wv"] + p["bv"]
    return jnp.concatenate([mean, log_var], axis=-1)


def reference_forward_bf16(x, p):
    """Pure-JAX reference matching the kernel's numerics: bf16 matmul operands,
    f32 accumulation, f32 bias-add / LeakyReLU."""
    bf = jnp.bfloat16
    lrelu = lambda v: jnp.maximum(v, 0.2 * v)
    mm = lambda a, w: jnp.dot(a.astype(bf), w.astype(bf),
                              preferred_element_type=jnp.float32)
    h = lrelu(mm(x, p["w1"]) + p["b1"])
    for _ in range(3):
        h = lrelu(mm(h, p["w2"]) + p["b2"])
    mean = mm(h, p["wm"]) + p["bm"]
    log_var = mm(h, p["wv"]) + p["bv"]
    return jnp.concatenate([mean, log_var], axis=-1)


if __name__ == "__main__":
    key = jax.random.PRNGKey(0)
    k_x, k_p = jax.random.split(key)

    batch, input_dim, hidden_dim, latent_dim = 8, 64, 32, 16
    x = jax.random.normal(k_x, (batch, input_dim), dtype=jnp.float32)
    params = init_params(k_p, input_dim, hidden_dim, latent_dim)

    out = naive_encoder(x, params)
    out = jax.block_until_ready(out)

    assert out.shape == (batch, 2 * latent_dim), out.shape

    # Tight check against a reference with identical (bf16-operand) numerics.
    ref_bf16 = reference_forward_bf16(x, params)
    assert jnp.allclose(out, ref_bf16, atol=5e-3, rtol=5e-2), \
        "mismatch vs bf16-operand reference"

    # Loose sanity check against exact PyTorch-f32 semantics.
    ref_f32 = reference_forward_f32(x, params)
    assert jnp.allclose(out, ref_f32, atol=1e-1, rtol=1e-1), \
        "mismatch vs f32 reference"

    print("KERNEL_OK")
</pallas_src>

<mosaic_0001>
module attributes {stable_mosaic.version = 11 : i64} {
  func.func @naive_encoder_kernel(%arg0: i32, %arg1: memref<8x128xbf16, #tpu.memory_space<vmem>>, %arg2: memref<128x128xbf16, #tpu.memory_space<vmem>>, %arg3: memref<1x128xf32, #tpu.memory_space<vmem>>, %arg4: memref<128x128xbf16, #tpu.memory_space<vmem>>, %arg5: memref<1x128xf32, #tpu.memory_space<vmem>>, %arg6: memref<128x128xbf16, #tpu.memory_space<vmem>>, %arg7: memref<1x128xf32, #tpu.memory_space<vmem>>, %arg8: memref<8x128xf32, #tpu.memory_space<vmem>>) attributes {dimension_semantics = [#tpu.dimension_semantics<parallel>], iteration_bounds = array<i64: 1>, scalar_prefetch = 0 : i64, scratch_operands = 0 : i64, tpu.core_type = #tpu.core_type<tc>, window_params = [{transform_indices = @transform_0, window_bounds = array<i64: 8, 128>}, {pipeline_mode = #tpu.pipeline_mode<synchronous>, transform_indices = @transform_1, window_bounds = array<i64: 128, 128>}, {pipeline_mode = #tpu.pipeline_mode<synchronous>, transform_indices = @transform_2, window_bounds = array<i64: 1, 128>}, {pipeline_mode = #tpu.pipeline_mode<synchronous>, transform_indices = @transform_3, window_bounds = array<i64: 128, 128>}, {pipeline_mode = #tpu.pipeline_mode<synchronous>, transform_indices = @transform_4, window_bounds = array<i64: 1, 128>}, {pipeline_mode = #tpu.pipeline_mode<synchronous>, transform_indices = @transform_5, window_bounds = array<i64: 128, 128>}, {pipeline_mode = #tpu.pipeline_mode<synchronous>, transform_indices = @transform_6, window_bounds = array<i64: 1, 128>}, {transform_indices = @transform_7, window_bounds = array<i64: 8, 128>}]} {
    %c0 = arith.constant 0 : index
    %c0_0 = arith.constant 0 : index
    %0 = vector.load %arg1[%c0, %c0_0] : memref<8x128xbf16, #tpu.memory_space<vmem>>, vector<8x128xbf16>
    %c0_1 = arith.constant 0 : index
    %c0_2 = arith.constant 0 : index
    %1 = vector.load %arg2[%c0_1, %c0_2] : memref<128x128xbf16, #tpu.memory_space<vmem>>, vector<128x128xbf16>
    %cst = arith.constant dense<0.000000e+00> : vector<8x128xf32>
    %2 = tpu.matmul %0, %1, %cst {dimension_numbers = #tpu.dot_dimension_numbers<[1], [0], [0], [1], [0, 0, 1, 1], [], []>} : vector<8x128xbf16>, vector<128x128xbf16>, vector<8x128xf32> -> vector<8x128xf32>
    %c0_3 = arith.constant 0 : index
    %c0_4 = arith.constant 0 : index
    %3 = vector.load %arg3[%c0_3, %c0_4] : memref<1x128xf32, #tpu.memory_space<vmem>>, vector<1x128xf32>
    %4 = vector.broadcast %3 : vector<1x128xf32> to vector<8x128xf32>
    %5 = arith.addf %2, %4 : vector<8x128xf32>
    %cst_5 = arith.constant 2.000000e-01 : f32
    %6 = vector.broadcast %cst_5 : f32 to vector<8x128xf32>
    %7 = arith.mulf %6, %5 : vector<8x128xf32>
    %8 = arith.maximumf %5, %7 : vector<8x128xf32>
    %c0_6 = arith.constant 0 : index
    %c0_7 = arith.constant 0 : index
    %9 = vector.load %arg4[%c0_6, %c0_7] : memref<128x128xbf16, #tpu.memory_space<vmem>>, vector<128x128xbf16>
    %c0_8 = arith.constant 0 : index
    %c0_9 = arith.constant 0 : index
    %10 = vector.load %arg5[%c0_8, %c0_9] : memref<1x128xf32, #tpu.memory_space<vmem>>, vector<1x128xf32>
    %11 = arith.truncf %8 : vector<8x128xf32> to vector<8x128xbf16>
    %cst_10 = arith.constant dense<0.000000e+00> : vector<8x128xf32>
    %12 = tpu.matmul %11, %9, %cst_10 {dimension_numbers = #tpu.dot_dimension_numbers<[1], [0], [0], [1], [0, 0, 1, 1], [], []>} : vector<8x128xbf16>, vector<128x128xbf16>, vector<8x128xf32> -> vector<8x128xf32>
    %13 = vector.broadcast %10 : vector<1x128xf32> to vector<8x128xf32>
    %14 = arith.addf %12, %13 : vector<8x128xf32>
    %cst_11 = arith.constant 2.000000e-01 : f32
    %15 = vector.broadcast %cst_11 : f32 to vector<8x128xf32>
    %16 = arith.mulf %15, %14 : vector<8x128xf32>
    %17 = arith.maximumf %14, %16 : vector<8x128xf32>
    %18 = arith.truncf %17 : vector<8x128xf32> to vector<8x128xbf16>
    %cst_12 = arith.constant dense<0.000000e+00> : vector<8x128xf32>
    %19 = tpu.matmul %18, %9, %cst_12 {dimension_numbers = #tpu.dot_dimension_numbers<[1], [0], [0], [1], [0, 0, 1, 1], [], []>} : vector<8x128xbf16>, vector<128x128xbf16>, vector<8x128xf32> -> vector<8x128xf32>
    %20 = vector.broadcast %10 : vector<1x128xf32> to vector<8x128xf32>
    %21 = arith.addf %19, %20 : vector<8x128xf32>
    %cst_13 = arith.constant 2.000000e-01 : f32
    %22 = vector.broadcast %cst_13 : f32 to vector<8x128xf32>
    %23 = arith.mulf %22, %21 : vector<8x128xf32>
    %24 = arith.maximumf %21, %23 : vector<8x128xf32>
    %25 = arith.truncf %24 : vector<8x128xf32> to vector<8x128xbf16>
    %cst_14 = arith.constant dense<0.000000e+00> : vector<8x128xf32>
    %26 = tpu.matmul %25, %9, %cst_14 {dimension_numbers = #tpu.dot_dimension_numbers<[1], [0], [0], [1], [0, 0, 1, 1], [], []>} : vector<8x128xbf16>, vector<128x128xbf16>, vector<8x128xf32> -> vector<8x128xf32>
    %27 = vector.broadcast %10 : vector<1x128xf32> to vector<8x128xf32>
    %28 = arith.addf %26, %27 : vector<8x128xf32>
    %cst_15 = arith.constant 2.000000e-01 : f32
    %29 = vector.broadcast %cst_15 : f32 to vector<8x128xf32>
    %30 = arith.mulf %29, %28 : vector<8x128xf32>
    %31 = arith.maximumf %28, %30 : vector<8x128xf32>
    %32 = arith.truncf %31 : vector<8x128xf32> to vector<8x128xbf16>
    %c0_16 = arith.constant 0 : index
    %c0_17 = arith.constant 0 : index
    %33 = vector.load %arg6[%c0_16, %c0_17] : memref<128x128xbf16, #tpu.memory_space<vmem>>, vector<128x128xbf16>
    %cst_18 = arith.constant dense<0.000000e+00> : vector<8x128xf32>
    %34 = tpu.matmul %32, %33, %cst_18 {dimension_numbers = #tpu.dot_dimension_numbers<[1], [0], [0], [1], [0, 0, 1, 1], [], []>} : vector<8x128xbf16>, vector<128x128xbf16>, vector<8x128xf32> -> vector<8x128xf32>
    %c0_19 = arith.constant 0 : index
    %c0_20 = arith.constant 0 : index
    %35 = vector.load %arg7[%c0_19, %c0_20] : memref<1x128xf32, #tpu.memory_space<vmem>>, vector<1x128xf32>
    %36 = vector.broadcast %35 : vector<1x128xf32> to vector<8x128xf32>
    %37 = arith.addf %34, %36 : vector<8x128xf32>
    %c0_21 = arith.constant 0 : index
    %c0_22 = arith.constant 0 : index
    %38 = vector.load %arg8[%c0_21, %c0_22] : memref<8x128xf32, #tpu.memory_space<vmem>>, vector<8x128xf32>
    tpu.vector_store %arg8[%c0_21, %c0_22], %37 {strides = array<i32>} : memref<8x128xf32, #tpu.memory_space<vmem>>, vector<8x128xf32>,
    return
  }
  func.func @transform_0(%arg0: i32) -> (i32, i32) {
    %c0_i32 = arith.constant 0 : i32
    %c0_i32_0 = arith.constant 0 : i32
    return %arg0, %c0_i32 : i32, i32
  }
  func.func @transform_1(%arg0: i32) -> (i32, i32) {
    %c0_i32 = arith.constant 0 : i32
    %c0_i32_0 = arith.constant 0 : i32
    %c0_i32_1 = arith.constant 0 : i32
    return %c0_i32, %c0_i32_0 : i32, i32
  }
  func.func @transform_2(%arg0: i32) -> (i32, i32) {
    %c0_i32 = arith.constant 0 : i32
    %c0_i32_0 = arith.constant 0 : i32
    %c0_i32_1 = arith.constant 0 : i32
    return %c0_i32, %c0_i32_0 : i32, i32
  }
  func.func @transform_3(%arg0: i32) -> (i32, i32) {
    %c0_i32 = arith.constant 0 : i32
    %c0_i32_0 = arith.constant 0 : i32
    %c0_i32_1 = arith.constant 0 : i32
    return %c0_i32, %c0_i32_0 : i32, i32
  }
  func.func @transform_4(%arg0: i32) -> (i32, i32) {
    %c0_i32 = arith.constant 0 : i32
    %c0_i32_0 = arith.constant 0 : i32
    %c0_i32_1 = arith.constant 0 : i32
    return %c0_i32, %c0_i32_0 : i32, i32
  }
  func.func @transform_5(%arg0: i32) -> (i32, i32) {
    %c0_i32 = arith.constant 0 : i32
    %c0_i32_0 = arith.constant 0 : i32
    %c0_i32_1 = arith.constant 0 : i32
    return %c0_i32, %c0_i32_0 : i32, i32
  }
  func.func @transform_6(%arg0: i32) -> (i32, i32) {
    %c0_i32 = arith.constant 0 : i32
    %c0_i32_0 = arith.constant 0 : i32
    %c0_i32_1 = arith.constant 0 : i32
    return %c0_i32, %c0_i32_0 : i32, i32
  }
  func.func @transform_7(%arg0: i32) -> (i32, i32) {
    %c0_i32 = arith.constant 0 : i32
    %c0_i32_0 = arith.constant 0 : i32
    return %arg0, %c0_i32 : i32, i32
  }
}

module attributes {stable_mosaic.version = 11 : i64} {
  func.func @naive_encoder_kernel(%arg0: i32, %arg1: memref<8x128xbf16, #tpu.memory_space<vmem>>, %arg2: memref<128x128xbf16, #tpu.memory_space<vmem>>, %arg3: memref<1x128xf32, #tpu.memory_space<vmem>>, %arg4: memref<128x128xbf16, #tpu.memory_space<vmem>>, %arg5: memref<1x128xf32, #tpu.memory_space<vmem>>, %arg6: memref<128x128xbf16, #tpu.memory_space<vmem>>, %arg7: memref<1x128xf32, #tpu.memory_space<vmem>>, %arg8: memref<8x128xf32, #tpu.memory_space<vmem>>) attributes {dimension_semantics = [#tpu.dimension_semantics<parallel>], iteration_bounds = array<i64: 1>, scalar_prefetch = 0 : i64, scratch_operands = 0 : i64, tpu.core_type = #tpu.core_type<tc>, window_params = [{transform_indices = @transform_0, window_bounds = array<i64: 8, 128>}, {pipeline_mode = #tpu.pipeline_mode<synchronous>, transform_indices = @transform_1, window_bounds = array<i64: 128, 128>}, {pipeline_mode = #tpu.pipeline_mode<synchronous>, transform_indices = @transform_2, window_bounds = array<i64: 1, 128>}, {pipeline_mode = #tpu.pipeline_mode<synchronous>, transform_indices = @transform_3, window_bounds = array<i64: 128, 128>}, {pipeline_mode = #tpu.pipeline_mode<synchronous>, transform_indices = @transform_4, window_bounds = array<i64: 1, 128>}, {pipeline_mode = #tpu.pipeline_mode<synchronous>, transform_indices = @transform_5, window_bounds = array<i64: 128, 128>}, {pipeline_mode = #tpu.pipeline_mode<synchronous>, transform_indices = @transform_6, window_bounds = array<i64: 1, 128>}, {transform_indices = @transform_7, window_bounds = array<i64: 8, 128>}]} {
    %c0 = arith.constant 0 : index
    %c0_0 = arith.constant 0 : index
    %0 = vector.load %arg1[%c0, %c0_0] : memref<8x128xbf16, #tpu.memory_space<vmem>>, vector<8x128xbf16>
    %c0_1 = arith.constant 0 : index
    %c0_2 = arith.constant 0 : index
    %1 = vector.load %arg2[%c0_1, %c0_2] : memref<128x128xbf16, #tpu.memory_space<vmem>>, vector<128x128xbf16>
    %cst = arith.constant dense<0.000000e+00> : vector<8x128xf32>
    %2 = tpu.matmul %0, %1, %cst {dimension_numbers = #tpu.dot_dimension_numbers<[1], [0], [0], [1], [0, 0, 1, 1], [], []>} : vector<8x128xbf16>, vector<128x128xbf16>, vector<8x128xf32> -> vector<8x128xf32>
    %c0_3 = arith.constant 0 : index
    %c0_4 = arith.constant 0 : index
    %3 = vector.load %arg3[%c0_3, %c0_4] : memref<1x128xf32, #tpu.memory_space<vmem>>, vector<1x128xf32>
    %4 = vector.broadcast %3 : vector<1x128xf32> to vector<8x128xf32>
    %5 = arith.addf %2, %4 : vector<8x128xf32>
    %cst_5 = arith.constant 2.000000e-01 : f32
    %6 = vector.broadcast %cst_5 : f32 to vector<8x128xf32>
    %7 = arith.mulf %6, %5 : vector<8x128xf32>
    %8 = arith.maximumf %5, %7 : vector<8x128xf32>
    %c0_6 = arith.constant 0 : index
    %c0_7 = arith.constant 0 : index
    %9 = vector.load %arg4[%c0_6, %c0_7] : memref<128x128xbf16, #tpu.memory_space<vmem>>, vector<128x128xbf16>
    %c0_8 = arith.constant 0 : index
    %c0_9 = arith.constant 0 : index
    %10 = vector.load %arg5[%c0_8, %c0_9] : memref<1x128xf32, #tpu.memory_space<vmem>>, vector<1x128xf32>
    %11 = arith.truncf %8 : vector<8x128xf32> to vector<8x128xbf16>
    %cst_10 = arith.constant dense<0.000000e+00> : vector<8x128xf32>
    %12 = tpu.matmul %11, %9, %cst_10 {dimension_numbers = #tpu.dot_dimension_numbers<[1], [0], [0], [1], [0, 0, 1, 1], [], []>} : vector<8x128xbf16>, vector<128x128xbf16>, vector<8x128xf32> -> vector<8x128xf32>
    %13 = vector.broadcast %10 : vector<1x128xf32> to vector<8x128xf32>
    %14 = arith.addf %12, %13 : vector<8x128xf32>
    %cst_11 = arith.constant 2.000000e-01 : f32
    %15 = vector.broadcast %cst_11 : f32 to vector<8x128xf32>
    %16 = arith.mulf %15, %14 : vector<8x128xf32>
    %17 = arith.maximumf %14, %16 : vector<8x128xf32>
    %18 = arith.truncf %17 : vector<8x128xf32> to vector<8x128xbf16>
    %cst_12 = arith.constant dense<0.000000e+00> : vector<8x128xf32>
    %19 = tpu.matmul %18, %9, %cst_12 {dimension_numbers = #tpu.dot_dimension_numbers<[1], [0], [0], [1], [0, 0, 1, 1], [], []>} : vector<8x128xbf16>, vector<128x128xbf16>, vector<8x128xf32> -> vector<8x128xf32>
    %20 = vector.broadcast %10 : vector<1x128xf32> to vector<8x128xf32>
    %21 = arith.addf %19, %20 : vector<8x128xf32>
    %cst_13 = arith.constant 2.000000e-01 : f32
    %22 = vector.broadcast %cst_13 : f32 to vector<8x128xf32>
    %23 = arith.mulf %22, %21 : vector<8x128xf32>
    %24 = arith.maximumf %21, %23 : vector<8x128xf32>
    %25 = arith.truncf %24 : vector<8x128xf32> to vector<8x128xbf16>
    %cst_14 = arith.constant dense<0.000000e+00> : vector<8x128xf32>
    %26 = tpu.matmul %25, %9, %cst_14 {dimension_numbers = #tpu.dot_dimension_numbers<[1], [0], [0], [1], [0, 0, 1, 1], [], []>} : vector<8x128xbf16>, vector<128x128xbf16>, vector<8x128xf32> -> vector<8x128xf32>
    %27 = vector.broadcast %10 : vector<1x128xf32> to vector<8x128xf32>
    %28 = arith.addf %26, %27 : vector<8x128xf32>
    %cst_15 = arith.constant 2.000000e-01 : f32
    %29 = vector.broadcast %cst_15 : f32 to vector<8x128xf32>
    %30 = arith.mulf %29, %28 : vector<8x128xf32>
    %31 = arith.maximumf %28, %30 : vector<8x128xf32>
    %32 = arith.truncf %31 : vector<8x128xf32> to vector<8x128xbf16>
    %c0_16 = arith.constant 0 : index
    %c0_17 = arith.constant 0 : index
    %33 = vector.load %arg6[%c0_16, %c0_17] : memref<128x128xbf16, #tpu.memory_space<vmem>>, vector<128x128xbf16>
    %cst_18 = arith.constant dense<0.000000e+00> : vector<8x128xf32>
    %34 = tpu.matmul %32, %33, %cst_18 {dimension_numbers = #tpu.dot_dimension_numbers<[1], [0], [0], [1], [0, 0, 1, 1], [], []>} : vector<8x128xbf16>, vector<128x128xbf16>, vector<8x128xf32> -> vector<8x128xf32>
    %c0_19 = arith.constant 0 : index
    %c0_20 = arith.constant 0 : index
    %35 = vector.load %arg7[%c0_19, %c0_20] : memref<1x128xf32, #tpu.memory_space<vmem>>, vector<1x128xf32>
    %36 = vector.broadcast %35 : vector<1x128xf32> to vector<8x128xf32>
    %37 = arith.addf %34, %36 : vector<8x128xf32>
    %c0_21 = arith.constant 0 : index
    %c0_22 = arith.constant 0 : index
    %38 = vector.load %arg8[%c0_21, %c0_22] : memref<8x128xf32, #tpu.memory_space<vmem>>, vector<8x128xf32>
    tpu.vector_store %arg8[%c0_21, %c0_22], %37 {strides = array<i32>} : memref<8x128xf32, #tpu.memory_space<vmem>>, vector<8x128xf32>,
    return
  }
  func.func @transform_0(%arg0: i32) -> (i32, i32) {
    %c0_i32 = arith.constant 0 : i32
    %c0_i32_0 = arith.constant 0 : i32
    return %arg0, %c0_i32 : i32, i32
  }
  func.func @transform_1(%arg0: i32) -> (i32, i32) {
    %c0_i32 = arith.constant 0 : i32
    %c0_i32_0 = arith.constant 0 : i32
    %c0_i32_1 = arith.constant 0 : i32
    return %c0_i32, %c0_i32_0 : i32, i32
  }
  func.func @transform_2(%arg0: i32) -> (i32, i32) {
    %c0_i32 = arith.constant 0 : i32
    %c0_i32_0 = arith.constant 0 : i32
    %c0_i32_1 = arith.constant 0 : i32
    return %c0_i32, %c0_i32_0 : i32, i32
  }
  func.func @transform_3(%arg0: i32) -> (i32, i32) {
    %c0_i32 = arith.constant 0 : i32
    %c0_i32_0 = arith.constant 0 : i32
    %c0_i32_1 = arith.constant 0 : i32
    return %c0_i32, %c0_i32_0 : i32, i32
  }
  func.func @transform_4(%arg0: i32) -> (i32, i32) {
    %c0_i32 = arith.constant 0 : i32
    %c0_i32_0 = arith.constant 0 : i32
    %c0_i32_1 = arith.constant 0 : i32
    return %c0_i32, %c0_i32_0 : i32, i32
  }
  func.func @transform_5(%arg0: i32) -> (i32, i32) {
    %c0_i32 = arith.constant 0 : i32
    %c0_i32_0 = arith.constant 0 : i32
    %c0_i32_1 = arith.constant 0 : i32
    return %c0_i32, %c0_i32_0 : i32, i32
  }
  func.func @transform_6(%arg0: i32) -> (i32, i32) {
    %c0_i32 = arith.constant 0 : i32
    %c0_i32_0 = arith.constant 0 : i32
    %c0_i32_1 = arith.constant 0 : i32
    return %c0_i32, %c0_i32_0 : i32, i32
  }
  func.func @transform_7(%arg0: i32) -> (i32, i32) {
    %c0_i32 = arith.constant 0 : i32
    %c0_i32_0 = arith.constant 0 : i32
    return %arg0, %c0_i32 : i32, i32
  }
}

</mosaic_0001>

<bundles_post_ra>
// kernel: tpu_custom_call.1
= control target key start
LH: loop header
LB: loop body
LE: loop exit
PB: predicated region body
PF: predicated region fallthrough
CT: control target
= control target key end

     0   :  { %12 = vsyncpa [#allocation3], 0  ;;  %s1040_s0 = inlined_call_operand.hbm [shape: bf16[8,128], index: 0, kind: input, shape index: {}]   ;;  %s1041_s1 = inlined_call_operand.hbm [shape: bf16[128,128], index: 1, kind: input, shape index: {}]   ;;  %s1042_s2 = inlined_call_operand.vmem [shape: f32[1,128], index: 2, kind: input, shape index: {}]   ;;  %s1043_s3 = inlined_call_operand.hbm [shape: bf16[128,128], index: 3, kind: input, shape index: {}]   ;;  %s1044_s4 = inlined_call_operand.vmem [shape: f32[1,128], index: 4, kind: input, shape index: {}]   ;;  %s1045_s5 = inlined_call_operand.hbm [shape: bf16[128,128], index: 5, kind: input, shape index: {}]   ;;  %s1046_s6 = inlined_call_operand.vmem [shape: f32[1,128], index: 6, kind: input, shape index: {}]   ;;  %s1047_s7 = inlined_call_operand.hbm [shape: f32[8,128], index: 7, kind: output, shape index: {}]  }
   0x1   :  { %13 = vsyncpa [#allocation6], 0 }
   0x2   :  { %14 = vsyncpa [#allocation9], 0 }
   0x3   :  { %15 = vsyncpa [#allocation4], 0  ;;  %s848_s24 = smov [#allocation5]   ;;  %s730_s28 = scalar_lea.hbm %s1041_s1, 1024 }
   0x4   :  { %s31_s25 = sshll.u32 %s848_s24, 4  ;;  %p731_p0 = scmp.ne.s32.totalorder %s1041_s1, %s730_s28  ;;  %s32_s25 = int_to_ptr.vmem [resolvable:$true] %s31_s25 }
   0x5   :  { %p734_p1 = scmp.lt.u32.totalorder %s730_s28, %s1041_s1 }
   0x7   :  { %p736_p2 = pnand %p734_p1, %p731_p0 }
   0x9   :  { %739 = shalt.err (!%p736_p2)
}
   0xa   :  { %s740_s10 = scalar_lea.vmem %s32_s25, 1024  ;;  %p745_p4 = scmp.lt.s32.totalorder %s32_s25, %s32_s25 }
   0xb   :  { %p741_p3 = scmp.ne.s32.totalorder %s32_s25, %s740_s10  ;;  %p746_p5 = scmp.lt.s32.totalorder %s740_s10, %s740_s10 }
   0xd   :  { %p747_p6 = por %p746_p5, %p745_p4 }
   0xf   :  { %p748_p7 = pnand %p747_p6, %p741_p3 }
  0x11   :  { %751 = shalt.err (!%p748_p7)
}
  0x12   :  { %s849_s11 = smov 64   ;;  %s850_s12 = smov 4  }
  0x13   :  { %37 = dma.hbm_to_vmem [thread:$0]  %s1041_s1, 1024, %s32_s25, [#allocation6], %s849_s11, %s849_s11, %s850_s12  }
  0x14   :  { %s851_s15 = smov [#allocation2]   ;;  %s852_s17 = smov [#allocation7]  }
  0x15   :  { %s22_s16 = sshll.u32 %s851_s15, 4  ;;  %s45_s18 = sshll.u32 %s852_s17, 4  ;;  %s23_s16 = int_to_ptr.vmem [resolvable:$true] %s22_s16  ;;  %s46_s18 = int_to_ptr.vmem [resolvable:$true] %s45_s18 }
  0x16   :  { %s752_s21 = scalar_lea.hbm %s1040_s0, 64 }
  0x17   :  { %p753_p8 = scmp.ne.s32.totalorder %s1040_s0, %s752_s21  ;;  %p756_p9 = scmp.lt.u32.totalorder %s752_s21, %s1040_s0 }
  0x19   :  { %p758_p10 = pnand %p756_p9, %p753_p8 }
  0x1b   :  { %761 = shalt.err (!%p758_p10)
}
  0x1c   :  { %s762_s1 = scalar_lea.vmem %s23_s16, 64  ;;  %p767_p12 = scmp.lt.s32.totalorder %s23_s16, %s23_s16 }
  0x1d   :  { %p763_p11 = scmp.ne.s32.totalorder %s23_s16, %s762_s1  ;;  %p768_p13 = scmp.lt.s32.totalorder %s762_s1, %s762_s1 }
  0x1f   :  { %p769_p0 = por %p768_p13, %p767_p12 }
  0x21   :  { %p770_p1 = pnand %p769_p0, %p763_p11 }
  0x23   :  { %773 = shalt.err (!%p770_p1)
}
  0x24   :  { %25 = dma.hbm_to_vmem [thread:$0]  %s1040_s0, 64, %s23_s16, [#allocation3]  }
  0x25   :  { %s774_s30 = scalar_lea.hbm %s1043_s3, 1024 }
  0x26   :  { %p775_p2 = scmp.ne.s32.totalorder %s1043_s3, %s774_s30  ;;  %p778_p3 = scmp.lt.u32.totalorder %s774_s30, %s1043_s3 }
  0x28   :  { %p780_p4 = pnand %p778_p3, %p775_p2 }
  0x2a   :  { %783 = shalt.err (!%p780_p4)
}
  0x2b   :  { %s784_s14 = scalar_lea.vmem %s46_s18, 1024  ;;  %p789_p6 = scmp.lt.s32.totalorder %s46_s18, %s46_s18 }
  0x2c   :  { %p785_p5 = scmp.ne.s32.totalorder %s46_s18, %s784_s14  ;;  %p790_p7 = scmp.lt.s32.totalorder %s784_s14, %s784_s14 }
  0x2e   :  { %p791_p8 = por %p790_p7, %p789_p6 }
  0x30   :  { %p792_p9 = pnand %p791_p8, %p785_p5 }
  0x32   :  { %795 = shalt.err (!%p792_p9)
}
  0x33   :  { %51 = dma.hbm_to_vmem [thread:$0]  %s1043_s3, 1024, %s46_s18, [#allocation6], %s849_s11, %s849_s11, %s850_s12  }
  0x34   :  { %s853_s16 = smov [#allocation8]   ;;  %s796_s21 = scalar_lea.hbm %s1045_s5, 1024 }
  0x35   :  { %s59_s17 = sshll.u32 %s853_s16, 4  ;;  %p797_p10 = scmp.ne.s32.totalorder %s1045_s5, %s796_s21  ;;  %s60_s17 = int_to_ptr.vmem [resolvable:$true] %s59_s17 }
  0x36   :  { %p800_p11 = scmp.lt.u32.totalorder %s796_s21, %s1045_s5 }
  0x38   :  { %p802_p12 = pnand %p800_p11, %p797_p10 }
  0x3a   :  { %805 = shalt.err (!%p802_p12)
}
  0x3b   :  { %s806_s1 = scalar_lea.vmem %s60_s17, 1024  ;;  %p811_p0 = scmp.lt.s32.totalorder %s60_s17, %s60_s17 }
  0x3c   :  { %p807_p13 = scmp.ne.s32.totalorder %s60_s17, %s806_s1  ;;  %p812_p1 = scmp.lt.s32.totalorder %s806_s1, %s806_s1 }
  0x3e   :  { %p813_p2 = por %p812_p1, %p811_p0 }
  0x40   :  { %p814_p3 = pnand %p813_p2, %p807_p13 }
  0x42   :  { %817 = shalt.err (!%p814_p3)
}
  0x43   :  { %65 = dma.hbm_to_vmem [thread:$0]  %s1045_s5, 1024, %s60_s17, [#allocation9], %s849_s11, %s849_s11, %s850_s12  }
  0x44   :  { %840 = dma.done.wait [#allocation3], 64  }
  0x45   :  { %841 = vsyncadd [#allocation3], 4294967232 }
  0x46   :  { %842 = dma.done.wait [#allocation6], 2048  }
  0x47   :  { %843 = vsyncadd [#allocation6], 4294965248 }
  0x48   :  { %844 = dma.done.wait [#allocation9], 1024  }
  0x49   :  { %845 = vsyncadd [#allocation9], 4294966272  ;;  %v854_v0 = vmov 0.0   ;;  %vm855_vm0 = vmmov 0   ;;  %v706_v1 = vld [vmem:[#allocation5] sm:$0xff]   ;;  %v707_v2 = vld [vmem:[#allocation5 + $0x8] sm:$0xff]  }
  0x4a   :  { %597 = vmatprep.subr.bf16.mxu0 %v854_v0  ;;  %613 = vmatprep.mubr.msk.bf16.mxu0 %vm855_vm0, %v854_v0  ;;  %v708_v3 = vld [vmem:[#allocation5 + $0x10] sm:$0xff]   ;;  %v962_v4 = vld [vmem:[#allocation7] sm:$0xff]   ;;  %v709_v5 = vld [vmem:[#allocation5 + $0x18] sm:$0xff]   ;;  %s856_s27 = smov [#allocation10]  }
  0x4b   :  { %617 = vmatprep.subr.bf16.mxu1 %v854_v0  ;;  %633 = vmatprep.mubr.msk.bf16.mxu1 %vm855_vm0, %v854_v0  ;;  %v966_v6 = vld [vmem:[#allocation7 + $0x8] sm:$0xff]   ;;  %v710_v7 = vld [vmem:[#allocation5 + $0x20] sm:$0xff]   ;;  %v969_v8 = vld [vmem:[#allocation7 + $0x10] sm:$0xff]   ;;  %s514_s28 = sshll.u32 %s856_s27, 4  ;;  %s515_s28 = int_to_ptr.vmem [resolvable:$true] %s514_s28 }
  0x4c   :  { %598 = vmatpush3.bf16.msra.mxu0 %v706_v1  ;;  %618 = vmatpush3.bf16.msra.mxu1 %v962_v4  ;;  %v711_v9 = vld [vmem:[#allocation5 + $0x28] sm:$0xff]   ;;  %v717_v10 = vld [vmem:[#allocation7 + $0x18] sm:$0xff]   ;;  %v712_v11 = vld [vmem:[#allocation5 + $0x30] sm:$0xff]   ;;  %s818_s29 = scalar_lea.vmem %s515_s28, 128  ;;  %p823_p5 = scmp.lt.s32.totalorder %s515_s28, %s515_s28 }
  0x4d   :  { %599 = vmatprep.subr.bf16.mxu0 %v854_v0  ;;  %619 = vmatprep.subr.bf16.mxu1 %v854_v0  ;;  %v718_v12 = vld [vmem:[#allocation7 + $0x20] sm:$0xff]   ;;  %v713_v13 = vld [vmem:[#allocation5 + $0x38] sm:$0xff]   ;;  %v719_v14 = vld [vmem:[#allocation7 + $0x28] sm:$0xff]   ;;  %p819_p4 = scmp.ne.s32.totalorder %s515_s28, %s818_s29  ;;  %p824_p6 = scmp.lt.s32.totalorder %s818_s29, %s818_s29 }
  0x4e   :  { %v81_v15 = vld [vmem:[#allocation2] sm:$0xf]  ;;  %v720_v16 = vld [vmem:[#allocation7 + $0x30] sm:$0xff]   ;;  %v722_v36 = vld [vmem:[#allocation8] sm:$0xff]  }
  0x4f   :  { %v721_v17 = vld [vmem:[#allocation7 + $0x38] sm:$0xff]   ;;  %v723_v37 = vld [vmem:[#allocation8 + $0x8] sm:$0xff]   ;;  %v724_v38 = vld [vmem:[#allocation8 + $0x10] sm:$0xff]   ;;  %p825_p7 = por %p824_p6, %p823_p5 }
  0x50   :  { %600 = vmatpush3.bf16.msra.mxu0 %v707_v2  ;;  %620 = vmatpush3.bf16.msra.mxu1 %v966_v6  ;;  %v525_v18 = vld [vmem:[%s1042_s2] ss:$0 sm:$0xff]  ;;  %v726_v40 = vld [vmem:[#allocation8 + $0x20] sm:$0xff]   ;;  %v727_v41 = vld [vmem:[#allocation8 + $0x28] sm:$0xff]  }
  0x51   :  { %601 = vmatprep.subr.bf16.mxu0 %v854_v0  ;;  %621 = vmatprep.subr.bf16.mxu1 %v854_v0  ;;  %v534_v27 = vld [vmem:[%s1044_s4] ss:$0 sm:$0xff]  ;;  %v728_v50 = vld [vmem:[#allocation8 + $0x30] sm:$0xff]   ;;  %p826_p8 = pnand %p825_p7, %p819_p4 }
  0x52   :  { %v725_v39 = vld [vmem:[#allocation8 + $0x18] sm:$0xff]  }
  0x53   :  { %v729_v51 = vld [vmem:[#allocation8 + $0x38] sm:$0xff]  }
  0x54   :  { %602 = vmatpush3.bf16.msra.mxu0 %v708_v3  ;;  %622 = vmatpush3.bf16.msra.mxu1 %v969_v8  ;;  %v543_v60 = vld [vmem:[%s1046_s6] ss:$0 sm:$0xff] }
  0x55   :  { %603 = vmatprep.subr.bf16.mxu0 %v854_v0  ;;  %623 = vmatprep.subr.bf16.mxu1 %v854_v0 }
  0x58   :  { %604 = vmatpush3.bf16.msra.mxu0 %v709_v5  ;;  %624 = vmatpush3.bf16.msra.mxu1 %v717_v10 }
  0x59   :  { %605 = vmatprep.subr.bf16.mxu0 %v854_v0  ;;  %625 = vmatprep.subr.bf16.mxu1 %v854_v0 }
  0x5c   :  { %606 = vmatpush3.bf16.msra.mxu0 %v710_v7  ;;  %626 = vmatpush3.bf16.msra.mxu1 %v718_v12 }
  0x5d   :  { %607 = vmatprep.subr.bf16.mxu0 %v854_v0  ;;  %627 = vmatprep.subr.bf16.mxu1 %v854_v0 }
  0x60   :  { %608 = vmatpush3.bf16.msra.mxu0 %v711_v9  ;;  %628 = vmatpush3.bf16.msra.mxu1 %v719_v14 }
  0x61   :  { %609 = vmatprep.subr.bf16.mxu0 %v854_v0  ;;  %629 = vmatprep.subr.bf16.mxu1 %v854_v0 }
  0x64   :  { %610 = vmatpush3.bf16.msra.mxu0 %v712_v11  ;;  %630 = vmatpush3.bf16.msra.mxu1 %v720_v16 }
  0x65   :  { %611 = vmatprep.subr.bf16.mxu0 %v854_v0  ;;  %631 = vmatprep.subr.bf16.mxu1 %v854_v0 }
  0x68   :  { %612 = vmatpush3.bf16.msra.mxu0 %v713_v13  ;;  %632 = vmatpush3.bf16.msra.mxu1 %v721_v17 }
  0x69   :  { %637 = vmatprep.subr.bf16.mxu0 %v854_v0  ;;  %657 = vmatprep.subr.bf16.mxu1 %v854_v0 }
  0x6b   :  { %614 = vmatmul.mubr.bf16.vlgmr.msra.gmra.mrb[0].mxu0 %v81_v15 }
  0x6c   :  { %638 = vmatpush3.bf16.msra.mxu0 %v962_v4  ;;  %653 = vmatprep.mubr.msk.bf16.mxu0 %vm855_vm0, %v854_v0 }
  0x6d   :  { %639 = vmatprep.subr.bf16.mxu0 %v854_v0 }
  0x70   :  { %640 = vmatpush3.bf16.msra.mxu0 %v966_v6 }
  0x71   :  { %641 = vmatprep.subr.bf16.mxu0 %v854_v0 }
  0x74   :  { %642 = vmatpush3.bf16.msra.mxu0 %v969_v8 }
  0x75   :  { %643 = vmatprep.subr.bf16.mxu0 %v854_v0 }
  0x78   :  { %644 = vmatpush3.bf16.msra.mxu0 %v717_v10 }
  0x79   :  { %645 = vmatprep.subr.bf16.mxu0 %v854_v0 }
  0x7c   :  { %646 = vmatpush3.bf16.msra.mxu0 %v718_v12 }
  0x7d   :  { %647 = vmatprep.subr.bf16.mxu0 %v854_v0 }
  0x80   :  { %648 = vmatpush3.bf16.msra.mxu0 %v719_v14 }
  0x81   :  { %649 = vmatprep.subr.bf16.mxu0 %v854_v0 }
  0x84   :  { %650 = vmatpush3.bf16.msra.mxu0 %v720_v16 }
  0x85   :  { %651 = vmatprep.subr.bf16.mxu0 %v854_v0 }
  0x88   :  { %652 = vmatpush3.bf16.msra.mxu0 %v721_v17 }
  0x89   :  { %677 = vmatprep.subr.bf16.mxu0 %v854_v0 }
 0x13e   :  { %v187_v19 = vpop.f32.mrb[0].mxu0 }
 0x13f   :  { %v188_v20 = vadd.f32 %v525_v18, %v187_v19  ;;  %v615_v21 = vpop.f32.mrb[1].mxu0 }
 0x140   :  { %v190_v22 = vpop.f32.mrb[2].mxu0 }
 0x141   :  { %v193_v23 = vmul.f32 0.2, %v188_v20  ;;  %v616_v24 = vpop.f32.mrb[3].mxu0 }
 0x143   :  { %v194_v25 = vmax.f32 %v188_v20, %v193_v23 }
 0x145   :  { %v212_v26 = vpack.c.bf16 %v194_v25, %v194_v25 }
 0x147   :  { %634 = vmatmul.mubr.bf16.vlgmr.msra.gmra.mrb[0].mxu1 %v212_v26 }
 0x148   :  { %658 = vmatpush3.bf16.msra.mxu1 %v962_v4  ;;  %673 = vmatprep.mubr.msk.bf16.mxu1 %vm855_vm0, %v854_v0 }
 0x149   :  { %659 = vmatprep.subr.bf16.mxu1 %v854_v0 }
 0x14c   :  { %660 = vmatpush3.bf16.msra.mxu1 %v966_v6 }
 0x14d   :  { %661 = vmatprep.subr.bf16.mxu1 %v854_v0 }
 0x150   :  { %662 = vmatpush3.bf16.msra.mxu1 %v969_v8 }
 0x151   :  { %663 = vmatprep.subr.bf16.mxu1 %v854_v0 }
 0x154   :  { %664 = vmatpush3.bf16.msra.mxu1 %v717_v10 }
 0x155   :  { %665 = vmatprep.subr.bf16.mxu1 %v854_v0 }
 0x158   :  { %666 = vmatpush3.bf16.msra.mxu1 %v718_v12 }
 0x159   :  { %667 = vmatprep.subr.bf16.mxu1 %v854_v0 }
 0x15c   :  { %668 = vmatpush3.bf16.msra.mxu1 %v719_v14 }
 0x15d   :  { %669 = vmatprep.subr.bf16.mxu1 %v854_v0 }
 0x160   :  { %670 = vmatpush3.bf16.msra.mxu1 %v720_v16 }
 0x161   :  { %671 = vmatprep.subr.bf16.mxu1 %v854_v0 }
 0x164   :  { %672 = vmatpush3.bf16.msra.mxu1 %v721_v17 }
 0x21a   :  { %v301_v28 = vpop.f32.mrb[0].mxu1 }
 0x21b   :  { %v302_v29 = vadd.f32 %v534_v27, %v301_v28  ;;  %v635_v30 = vpop.f32.mrb[1].mxu1 }
 0x21c   :  { %v304_v31 = vpop.f32.mrb[2].mxu1 }
 0x21d   :  { %v307_v32 = vmul.f32 0.2, %v302_v29  ;;  %v636_v33 = vpop.f32.mrb[3].mxu1 }
 0x21f   :  { %v308_v34 = vmax.f32 %v302_v29, %v307_v32 }
 0x221   :  { %v309_v35 = vpack.c.bf16 %v308_v34, %v308_v34 }
 0x223   :  { %654 = vmatmul.mubr.bf16.vlgmr.msra.gmra.mrb[4].mxu0 %v309_v35 }
 0x224   :  { %693 = vmatprep.mubr.msk.bf16.mxu0 %vm855_vm0, %v854_v0  ;;  %678 = vmatpush3.bf16.msra.mxu0 %v722_v36 }
 0x225   :  { %679 = vmatprep.subr.bf16.mxu0 %v854_v0 }
 0x228   :  { %680 = vmatpush3.bf16.msra.mxu0 %v723_v37 }
 0x229   :  { %681 = vmatprep.subr.bf16.mxu0 %v854_v0 }
 0x22c   :  { %682 = vmatpush3.bf16.msra.mxu0 %v724_v38 }
 0x22d   :  { %683 = vmatprep.subr.bf16.mxu0 %v854_v0 }
 0x230   :  { %684 = vmatpush3.bf16.msra.mxu0 %v725_v39 }
 0x231   :  { %685 = vmatprep.subr.bf16.mxu0 %v854_v0 }
 0x234   :  { %686 = vmatpush3.bf16.msra.mxu0 %v726_v40 }
 0x235   :  { %687 = vmatprep.subr.bf16.mxu0 %v854_v0 }
 0x238   :  { %688 = vmatpush3.bf16.msra.mxu0 %v727_v41 }
 0x239   :  { %689 = vmatprep.subr.bf16.mxu0 %v854_v0 }
 0x23c   :  { %690 = vmatpush3.bf16.msra.mxu0 %v728_v50 }
 0x23d   :  { %691 = vmatprep.subr.bf16.mxu0 %v854_v0 }
 0x240   :  { %692 = vmatpush3.bf16.msra.mxu0 %v729_v51 }
 0x2f6   :  { %v344_v42 = vpop.f32.mrb[4].mxu0 }
 0x2f7   :  { %v345_v43 = vadd.f32 %v534_v27, %v344_v42  ;;  %v655_v44 = vpop.f32.mrb[5].mxu0 }
 0x2f8   :  { %v347_v45 = vpop.f32.mrb[6].mxu0 }
 0x2f9   :  { %v350_v46 = vmul.f32 0.2, %v345_v43  ;;  %v656_v47 = vpop.f32.mrb[7].mxu0 }
 0x2fb   :  { %v351_v48 = vmax.f32 %v345_v43, %v350_v46 }
 0x2fd   :  { %v352_v49 = vpack.c.bf16 %v351_v48, %v351_v48 }
 0x2ff   :  { %674 = vmatmul.mubr.bf16.vlgmr.msra.gmra.mrb[4].mxu1 %v352_v49 }
 0x3d2   :  { %v387_v52 = vpop.f32.mrb[4].mxu1 }
 0x3d3   :  { %v388_v53 = vadd.f32 %v534_v27, %v387_v52  ;;  %v675_v54 = vpop.f32.mrb[5].mxu1 }
 0x3d4   :  { %v390_v55 = vpop.f32.mrb[6].mxu1 }
 0x3d5   :  { %v393_v56 = vmul.f32 0.2, %v388_v53  ;;  %v676_v57 = vpop.f32.mrb[7].mxu1 }
 0x3d7   :  { %v394_v58 = vmax.f32 %v388_v53, %v393_v56 }
 0x3d9   :  { %v395_v59 = vpack.c.bf16 %v394_v58, %v394_v58 }
 0x3db   :  { %694 = vmatmul.mubr.bf16.vlgmr.msra.gmra.mrb[8].mxu0 %v395_v59 }
 0x4ae   :  { %v501_v61 = vpop.f32.mrb[8].mxu0 }
 0x4af   :  { %v502_v62 = vadd.f32 %v543_v60, %v501_v61  ;;  %v695_v63 = vpop.f32.mrb[9].mxu0 }
 0x4b0   :  { %v504_v0 = vpop.f32.mrb[10].mxu0 }
 0x4b1   :  { %507 = vst [vmem:[#allocation10] sm:$0xff] %v502_v62  ;;  %v696_v1 = vpop.f32.mrb[11].mxu0 }
 0x4b2   :  { %829 = shalt.err (!%p826_p8)
}
 0x4b3   :  { %s830_s6 = scalar_lea.hbm %s1047_s7, 128 }
 0x4b4   :  { %p831_p9 = scmp.ne.s32.totalorder %s1047_s7, %s830_s6  ;;  %p834_p10 = scmp.lt.u32.totalorder %s830_s6, %s1047_s7 }
 0x4b6   :  { %p836_p11 = pnand %p834_p10, %p831_p9 }
 0x4b8   :  { %839 = shalt.err (!%p836_p11)
}
 0x4b9   :  { %517 = dma.vmem_to_hbm [thread:$0]  %s515_s28, 128, %s1047_s7, [#allocation4]  }
 0x4ba   :  { %846 = dma.done.wait [#allocation4], 128  }
 0x4bb   :  { %847 = vsyncadd [#allocation4], 4294967168 }
 0x4bc   :  { %521 = vsyncpa [#allocation3], 1 }
 0x4bd   :  { %522 = vsyncpa [#allocation6], 1 }
 0x4be   :  { %523 = vsyncpa [#allocation9], 1 }
 0x4bf   :  { %524 = vsyncpa [#allocation4], 1 }

// kernel: tpu_custom_call.1
= control target key start
LH: loop header
LB: loop body
LE: loop exit
PB: predicated region body
PF: predicated region fallthrough
CT: control target
= control target key end

     0   :  { %12 = vsyncpa [#allocation3], 0  ;;  %s1040_s0 = inlined_call_operand.hbm [shape: bf16[8,128], index: 0, kind: input, shape index: {}]   ;;  %s1041_s1 = inlined_call_operand.hbm [shape: bf16[128,128], index: 1, kind: input, shape index: {}]   ;;  %s1042_s2 = inlined_call_operand.vmem [shape: f32[1,128], index: 2, kind: input, shape index: {}]   ;;  %s1043_s3 = inlined_call_operand.hbm [shape: bf16[128,128], index: 3, kind: input, shape index: {}]   ;;  %s1044_s4 = inlined_call_operand.vmem [shape: f32[1,128], index: 4, kind: input, shape index: {}]   ;;  %s1045_s5 = inlined_call_operand.hbm [shape: bf16[128,128], index: 5, kind: input, shape index: {}]   ;;  %s1046_s6 = inlined_call_operand.vmem [shape: f32[1,128], index: 6, kind: input, shape index: {}]   ;;  %s1047_s7 = inlined_call_operand.hbm [shape: f32[8,128], index: 7, kind: output, shape index: {}]  }
   0x1   :  { %13 = vsyncpa [#allocation6], 0 }
   0x2   :  { %14 = vsyncpa [#allocation9], 0 }
   0x3   :  { %15 = vsyncpa [#allocation4], 0  ;;  %s848_s24 = smov [#allocation5]   ;;  %s730_s28 = scalar_lea.hbm %s1041_s1, 1024 }
   0x4   :  { %s31_s25 = sshll.u32 %s848_s24, 4  ;;  %p731_p0 = scmp.ne.s32.totalorder %s1041_s1, %s730_s28  ;;  %s32_s25 = int_to_ptr.vmem [resolvable:$true] %s31_s25 }
   0x5   :  { %p734_p1 = scmp.lt.u32.totalorder %s730_s28, %s1041_s1 }
   0x7   :  { %p736_p2 = pnand %p734_p1, %p731_p0 }
   0x9   :  { %739 = shalt.err (!%p736_p2)
}
   0xa   :  { %s740_s10 = scalar_lea.vmem %s32_s25, 1024  ;;  %p745_p4 = scmp.lt.s32.totalorder %s32_s25, %s32_s25 }
   0xb   :  { %p741_p3 = scmp.ne.s32.totalorder %s32_s25, %s740_s10  ;;  %p746_p5 = scmp.lt.s32.totalorder %s740_s10, %s740_s10 }
   0xd   :  { %p747_p6 = por %p746_p5, %p745_p4 }
   0xf   :  { %p748_p7 = pnand %p747_p6, %p741_p3 }
  0x11   :  { %751 = shalt.err (!%p748_p7)
}
  0x12   :  { %s849_s11 = smov 64   ;;  %s850_s12 = smov 4  }
  0x13   :  { %37 = dma.hbm_to_vmem [thread:$0]  %s1041_s1, 1024, %s32_s25, [#allocation6], %s849_s11, %s849_s11, %s850_s12  }
  0x14   :  { %s851_s15 = smov [#allocation2]   ;;  %s852_s17 = smov [#allocation7]  }
  0x15   :  { %s22_s16 = sshll.u32 %s851_s15, 4  ;;  %s45_s18 = sshll.u32 %s852_s17, 4  ;;  %s23_s16 = int_to_ptr.vmem [resolvable:$true] %s22_s16  ;;  %s46_s18 = int_to_ptr.vmem [resolvable:$true] %s45_s18 }
  0x16   :  { %s752_s21 = scalar_lea.hbm %s1040_s0, 64 }
  0x17   :  { %p753_p8 = scmp.ne.s32.totalorder %s1040_s0, %s752_s21  ;;  %p756_p9 = scmp.lt.u32.totalorder %s752_s21, %s1040_s0 }
  0x19   :  { %p758_p10 = pnand %p756_p9, %p753_p8 }
  0x1b   :  { %761 = shalt.err (!%p758_p10)
}
  0x1c   :  { %s762_s1 = scalar_lea.vmem %s23_s16, 64  ;;  %p767_p12 = scmp.lt.s32.totalorder %s23_s16, %s23_s16 }
  0x1d   :  { %p763_p11 = scmp.ne.s32.totalorder %s23_s16, %s762_s1  ;;  %p768_p13 = scmp.lt.s32.totalorder %s762_s1, %s762_s1 }
  0x1f   :  { %p769_p0 = por %p768_p13, %p767_p12 }
  0x21   :  { %p770_p1 = pnand %p769_p0, %p763_p11 }
  0x23   :  { %773 = shalt.err (!%p770_p1)
}
  0x24   :  { %25 = dma.hbm_to_vmem [thread:$0]  %s1040_s0, 64, %s23_s16, [#allocation3]  }
  0x25   :  { %s774_s30 = scalar_lea.hbm %s1043_s3, 1024 }
  0x26   :  { %p775_p2 = scmp.ne.s32.totalorder %s1043_s3, %s774_s30  ;;  %p778_p3 = scmp.lt.u32.totalorder %s774_s30, %s1043_s3 }
  0x28   :  { %p780_p4 = pnand %p778_p3, %p775_p2 }
  0x2a   :  { %783 = shalt.err (!%p780_p4)
}
  0x2b   :  { %s784_s14 = scalar_lea.vmem %s46_s18, 1024  ;;  %p789_p6 = scmp.lt.s32.totalorder %s46_s18, %s46_s18 }
  0x2c   :  { %p785_p5 = scmp.ne.s32.totalorder %s46_s18, %s784_s14  ;;  %p790_p7 = scmp.lt.s32.totalorder %s784_s14, %s784_s14 }
  0x2e   :  { %p791_p8 = por %p790_p7, %p789_p6 }
  0x30   :  { %p792_p9 = pnand %p791_p8, %p785_p5 }
  0x32   :  { %795 = shalt.err (!%p792_p9)
}
  0x33   :  { %51 = dma.hbm_to_vmem [thread:$0]  %s1043_s3, 1024, %s46_s18, [#allocation6], %s849_s11, %s849_s11, %s850_s12  }
  0x34   :  { %s853_s16 = smov [#allocation8]   ;;  %s796_s21 = scalar_lea.hbm %s1045_s5, 1024 }
  0x35   :  { %s59_s17 = sshll.u32 %s853_s16, 4  ;;  %p797_p10 = scmp.ne.s32.totalorder %s1045_s5, %s796_s21  ;;  %s60_s17 = int_to_ptr.vmem [resolvable:$true] %s59_s17 }
  0x36   :  { %p800_p11 = scmp.lt.u32.totalorder %s796_s21, %s1045_s5 }
  0x38   :  { %p802_p12 = pnand %p800_p11, %p797_p10 }
  0x3a   :  { %805 = shalt.err (!%p802_p12)
}
  0x3b   :  { %s806_s1 = scalar_lea.vmem %s60_s17, 1024  ;;  %p811_p0 = scmp.lt.s32.totalorder %s60_s17, %s60_s17 }
  0x3c   :  { %p807_p13 = scmp.ne.s32.totalorder %s60_s17, %s806_s1  ;;  %p812_p1 = scmp.lt.s32.totalorder %s806_s1, %s806_s1 }
  0x3e   :  { %p813_p2 = por %p812_p1, %p811_p0 }
  0x40   :  { %p814_p3 = pnand %p813_p2, %p807_p13 }
  0x42   :  { %817 = shalt.err (!%p814_p3)
}
  0x43   :  { %65 = dma.hbm_to_vmem [thread:$0]  %s1045_s5, 1024, %s60_s17, [#allocation9], %s849_s11, %s849_s11, %s850_s12  }
  0x44   :  { %840 = dma.done.wait [#allocation3], 64  }
  0x45   :  { %841 = vsyncadd [#allocation3], 4294967232 }
  0x46   :  { %842 = dma.done.wait [#allocation6], 2048  }
  0x47   :  { %843 = vsyncadd [#allocation6], 4294965248 }
  0x48   :  { %844 = dma.done.wait [#allocation9], 1024  }
  0x49   :  { %845 = vsyncadd [#allocation9], 4294966272  ;;  %v854_v0 = vmov 0.0   ;;  %vm855_vm0 = vmmov 0   ;;  %v706_v1 = vld [vmem:[#allocation5] sm:$0xff]   ;;  %v707_v2 = vld [vmem:[#allocation5 + $0x8] sm:$0xff]  }
  0x4a   :  { %597 = vmatprep.subr.bf16.mxu0 %v854_v0  ;;  %613 = vmatprep.mubr.msk.bf16.mxu0 %vm855_vm0, %v854_v0  ;;  %v708_v3 = vld [vmem:[#allocation5 + $0x10] sm:$0xff]   ;;  %v962_v4 = vld [vmem:[#allocation7] sm:$0xff]   ;;  %v709_v5 = vld [vmem:[#allocation5 + $0x18] sm:$0xff]   ;;  %s856_s27 = smov [#allocation10]  }
  0x4b   :  { %617 = vmatprep.subr.bf16.mxu1 %v854_v0  ;;  %633 = vmatprep.mubr.msk.bf16.mxu1 %vm855_vm0, %v854_v0  ;;  %v966_v6 = vld [vmem:[#allocation7 + $0x8] sm:$0xff]   ;;  %v710_v7 = vld [vmem:[#allocation5 + $0x20] sm:$0xff]   ;;  %v969_v8 = vld [vmem:[#allocation7 + $0x10] sm:$0xff]   ;;  %s514_s28 = sshll.u32 %s856_s27, 4  ;;  %s515_s28 = int_to_ptr.vmem [resolvable:$true] %s514_s28 }
  0x4c   :  { %598 = vmatpush3.bf16.msra.mxu0 %v706_v1  ;;  %618 = vmatpush3.bf16.msra.mxu1 %v962_v4  ;;  %v711_v9 = vld [vmem:[#allocation5 + $0x28] sm:$0xff]   ;;  %v717_v10 = vld [vmem:[#allocation7 + $0x18] sm:$0xff]   ;;  %v712_v11 = vld [vmem:[#allocation5 + $0x30] sm:$0xff]   ;;  %s818_s29 = scalar_lea.vmem %s515_s28, 128  ;;  %p823_p5 = scmp.lt.s32.totalorder %s515_s28, %s515_s28 }
  0x4d   :  { %599 = vmatprep.subr.bf16.mxu0 %v854_v0  ;;  %619 = vmatprep.subr.bf16.mxu1 %v854_v0  ;;  %v718_v12 = vld [vmem:[#allocation7 + $0x20] sm:$0xff]   ;;  %v713_v13 = vld [vmem:[#allocation5 + $0x38] sm:$0xff]   ;;  %v719_v14 = vld [vmem:[#allocation7 + $0x28] sm:$0xff]   ;;  %p819_p4 = scmp.ne.s32.totalorder %s515_s28, %s818_s29  ;;  %p824_p6 = scmp.lt.s32.totalorder %s818_s29, %s818_s29 }
  0x4e   :  { %v81_v15 = vld [vmem:[#allocation2] sm:$0xf]  ;;  %v720_v16 = vld [vmem:[#allocation7 + $0x30] sm:$0xff]   ;;  %v722_v36 = vld [vmem:[#allocation8] sm:$0xff]  }
  0x4f   :  { %v721_v17 = vld [vmem:[#allocation7 + $0x38] sm:$0xff]   ;;  %v723_v37 = vld [vmem:[#allocation8 + $0x8] sm:$0xff]   ;;  %v724_v38 = vld [vmem:[#allocation8 + $0x10] sm:$0xff]   ;;  %p825_p7 = por %p824_p6, %p823_p5 }
  0x50   :  { %600 = vmatpush3.bf16.msra.mxu0 %v707_v2  ;;  %620 = vmatpush3.bf16.msra.mxu1 %v966_v6  ;;  %v525_v18 = vld [vmem:[%s1042_s2] ss:$0 sm:$0xff]  ;;  %v726_v40 = vld [vmem:[#allocation8 + $0x20] sm:$0xff]   ;;  %v727_v41 = vld [vmem:[#allocation8 + $0x28] sm:$0xff]  }
  0x51   :  { %601 = vmatprep.subr.bf16.mxu0 %v854_v0  ;;  %621 = vmatprep.subr.bf16.mxu1 %v854_v0  ;;  %v534_v27 = vld [vmem:[%s1044_s4] ss:$0 sm:$0xff]  ;;  %v728_v50 = vld [vmem:[#allocation8 + $0x30] sm:$0xff]   ;;  %p826_p8 = pnand %p825_p7, %p819_p4 }
  0x52   :  { %v725_v39 = vld [vmem:[#allocation8 + $0x18] sm:$0xff]  }
  0x53   :  { %v729_v51 = vld [vmem:[#allocation8 + $0x38] sm:$0xff]  }
  0x54   :  { %602 = vmatpush3.bf16.msra.mxu0 %v708_v3  ;;  %622 = vmatpush3.bf16.msra.mxu1 %v969_v8  ;;  %v543_v60 = vld [vmem:[%s1046_s6] ss:$0 sm:$0xff] }
  0x55   :  { %603 = vmatprep.subr.bf16.mxu0 %v854_v0  ;;  %623 = vmatprep.subr.bf16.mxu1 %v854_v0 }
  0x58   :  { %604 = vmatpush3.bf16.msra.mxu0 %v709_v5  ;;  %624 = vmatpush3.bf16.msra.mxu1 %v717_v10 }
  0x59   :  { %605 = vmatprep.subr.bf16.mxu0 %v854_v0  ;;  %625 = vmatprep.subr.bf16.mxu1 %v854_v0 }
  0x5c   :  { %606 = vmatpush3.bf16.msra.mxu0 %v710_v7  ;;  %626 = vmatpush3.bf16.msra.mxu1 %v718_v12 }
  0x5d   :  { %607 = vmatprep.subr.bf16.mxu0 %v854_v0  ;;  %627 = vmatprep.subr.bf16.mxu1 %v854_v0 }
  0x60   :  { %608 = vmatpush3.bf16.msra.mxu0 %v711_v9  ;;  %628 = vmatpush3.bf16.msra.mxu1 %v719_v14 }
  0x61   :  { %609 = vmatprep.subr.bf16.mxu0 %v854_v0  ;;  %629 = vmatprep.subr.bf16.mxu1 %v854_v0 }
  0x64   :  { %610 = vmatpush3.bf16.msra.mxu0 %v712_v11  ;;  %630 = vmatpush3.bf16.msra.mxu1 %v720_v16 }
  0x65   :  { %611 = vmatprep.subr.bf16.mxu0 %v854_v0  ;;  %631 = vmatprep.subr.bf16.mxu1 %v854_v0 }
  0x68   :  { %612 = vmatpush3.bf16.msra.mxu0 %v713_v13  ;;  %632 = vmatpush3.bf16.msra.mxu1 %v721_v17 }
  0x69   :  { %637 = vmatprep.subr.bf16.mxu0 %v854_v0  ;;  %657 = vmatprep.subr.bf16.mxu1 %v854_v0 }
  0x6b   :  { %614 = vmatmul.mubr.bf16.vlgmr.msra.gmra.mrb[0].mxu0 %v81_v15 }
  0x6c   :  { %638 = vmatpush3.bf16.msra.mxu0 %v962_v4  ;;  %653 = vmatprep.mubr.msk.bf16.mxu0 %vm855_vm0, %v854_v0 }
  0x6d   :  { %639 = vmatprep.subr.bf16.mxu0 %v854_v0 }
  0x70   :  { %640 = vmatpush3.bf16.msra.mxu0 %v966_v6 }
  0x71   :  { %641 = vmatprep.subr.bf16.mxu0 %v854_v0 }
  0x74   :  { %642 = vmatpush3.bf16.msra.mxu0 %v969_v8 }
  0x75   :  { %643 = vmatprep.subr.bf16.mxu0 %v854_v0 }
  0x78   :  { %644 = vmatpush3.bf16.msra.mxu0 %v717_v10 }
  0x79   :  { %645 = vmatprep.subr.bf16.mxu0 %v854_v0 }
  0x7c   :  { %646 = vmatpush3.bf16.msra.mxu0 %v718_v12 }
  0x7d   :  { %647 = vmatprep.subr.bf16.mxu0 %v854_v0 }
  0x80   :  { %648 = vmatpush3.bf16.msra.mxu0 %v719_v14 }
  0x81   :  { %649 = vmatprep.subr.bf16.mxu0 %v854_v0 }
  0x84   :  { %650 = vmatpush3.bf16.msra.mxu0 %v720_v16 }
  0x85   :  { %651 = vmatprep.subr.bf16.mxu0 %v854_v0 }
  0x88   :  { %652 = vmatpush3.bf16.msra.mxu0 %v721_v17 }
  0x89   :  { %677 = vmatprep.subr.bf16.mxu0 %v854_v0 }
 0x13e   :  { %v187_v19 = vpop.f32.mrb[0].mxu0 }
 0x13f   :  { %v188_v20 = vadd.f32 %v525_v18, %v187_v19  ;;  %v615_v21 = vpop.f32.mrb[1].mxu0 }
 0x140   :  { %v190_v22 = vpop.f32.mrb[2].mxu0 }
 0x141   :  { %v193_v23 = vmul.f32 0.2, %v188_v20  ;;  %v616_v24 = vpop.f32.mrb[3].mxu0 }
 0x143   :  { %v194_v25 = vmax.f32 %v188_v20, %v193_v23 }
 0x145   :  { %v212_v26 = vpack.c.bf16 %v194_v25, %v194_v25 }
 0x147   :  { %634 = vmatmul.mubr.bf16.vlgmr.msra.gmra.mrb[0].mxu1 %v212_v26 }
 0x148   :  { %658 = vmatpush3.bf16.msra.mxu1 %v962_v4  ;;  %673 = vmatprep.mubr.msk.bf16.mxu1 %vm855_vm0, %v854_v0 }
 0x149   :  { %659 = vmatprep.subr.bf16.mxu1 %v854_v0 }
 0x14c   :  { %660 = vmatpush3.bf16.msra.mxu1 %v966_v6 }
 0x14d   :  { %661 = vmatprep.subr.bf16.mxu1 %v854_v0 }
 0x150   :  { %662 = vmatpush3.bf16.msra.mxu1 %v969_v8 }
 0x151   :  { %663 = vmatprep.subr.bf16.mxu1 %v854_v0 }
 0x154   :  { %664 = vmatpush3.bf16.msra.mxu1 %v717_v10 }
 0x155   :  { %665 = vmatprep.subr.bf16.mxu1 %v854_v0 }
 0x158   :  { %666 = vmatpush3.bf16.msra.mxu1 %v718_v12 }
 0x159   :  { %667 = vmatprep.subr.bf16.mxu1 %v854_v0 }
 0x15c   :  { %668 = vmatpush3.bf16.msra.mxu1 %v719_v14 }
 0x15d   :  { %669 = vmatprep.subr.bf16.mxu1 %v854_v0 }
 0x160   :  { %670 = vmatpush3.bf16.msra.mxu1 %v720_v16 }
 0x161   :  { %671 = vmatprep.subr.bf16.mxu1 %v854_v0 }
 0x164   :  { %672 = vmatpush3.bf16.msra.mxu1 %v721_v17 }
 0x21a   :  { %v301_v28 = vpop.f32.mrb[0].mxu1 }
 0x21b   :  { %v302_v29 = vadd.f32 %v534_v27, %v301_v28  ;;  %v635_v30 = vpop.f32.mrb[1].mxu1 }
 0x21c   :  { %v304_v31 = vpop.f32.mrb[2].mxu1 }
 0x21d   :  { %v307_v32 = vmul.f32 0.2, %v302_v29  ;;  %v636_v33 = vpop.f32.mrb[3].mxu1 }
 0x21f   :  { %v308_v34 = vmax.f32 %v302_v29, %v307_v32 }
 0x221   :  { %v309_v35 = vpack.c.bf16 %v308_v34, %v308_v34 }
 0x223   :  { %654 = vmatmul.mubr.bf16.vlgmr.msra.gmra.mrb[4].mxu0 %v309_v35 }
 0x224   :  { %693 = vmatprep.mubr.msk.bf16.mxu0 %vm855_vm0, %v854_v0  ;;  %678 = vmatpush3.bf16.msra.mxu0 %v722_v36 }
 0x225   :  { %679 = vmatprep.subr.bf16.mxu0 %v854_v0 }
 0x228   :  { %680 = vmatpush3.bf16.msra.mxu0 %v723_v37 }
 0x229   :  { %681 = vmatprep.subr.bf16.mxu0 %v854_v0 }
 0x22c   :  { %682 = vmatpush3.bf16.msra.mxu0 %v724_v38 }
 0x22d   :  { %683 = vmatprep.subr.bf16.mxu0 %v854_v0 }
 0x230   :  { %684 = vmatpush3.bf16.msra.mxu0 %v725_v39 }
 0x231   :  { %685 = vmatprep.subr.bf16.mxu0 %v854_v0 }
 0x234   :  { %686 = vmatpush3.bf16.msra.mxu0 %v726_v40 }
 0x235   :  { %687 = vmatprep.subr.bf16.mxu0 %v854_v0 }
 0x238   :  { %688 = vmatpush3.bf16.msra.mxu0 %v727_v41 }
 0x239   :  { %689 = vmatprep.subr.bf16.mxu0 %v854_v0 }
 0x23c   :  { %690 = vmatpush3.bf16.msra.mxu0 %v728_v50 }
 0x23d   :  { %691 = vmatprep.subr.bf16.mxu0 %v854_v0 }
 0x240   :  { %692 = vmatpush3.bf16.msra.mxu0 %v729_v51 }
 0x2f6   :  { %v344_v42 = vpop.f32.mrb[4].mxu0 }
 0x2f7   :  { %v345_v43 = vadd.f32 %v534_v27, %v344_v42  ;;  %v655_v44 = vpop.f32.mrb[5].mxu0 }
 0x2f8   :  { %v347_v45 = vpop.f32.mrb[6].mxu0 }
 0x2f9   :  { %v350_v46 = vmul.f32 0.2, %v345_v43  ;;  %v656_v47 = vpop.f32.mrb[7].mxu0 }
 0x2fb   :  { %v351_v48 = vmax.f32 %v345_v43, %v350_v46 }
 0x2fd   :  { %v352_v49 = vpack.c.bf16 %v351_v48, %v351_v48 }
 0x2ff   :  { %674 = vmatmul.mubr.bf16.vlgmr.msra.gmra.mrb[4].mxu1 %v352_v49 }
 0x3d2   :  { %v387_v52 = vpop.f32.mrb[4].mxu1 }
 0x3d3   :  { %v388_v53 = vadd.f32 %v534_v27, %v387_v52  ;;  %v675_v54 = vpop.f32.mrb[5].mxu1 }
 0x3d4   :  { %v390_v55 = vpop.f32.mrb[6].mxu1 }
 0x3d5   :  { %v393_v56 = vmul.f32 0.2, %v388_v53  ;;  %v676_v57 = vpop.f32.mrb[7].mxu1 }
 0x3d7   :  { %v394_v58 = vmax.f32 %v388_v53, %v393_v56 }
 0x3d9   :  { %v395_v59 = vpack.c.bf16 %v394_v58, %v394_v58 }
 0x3db   :  { %694 = vmatmul.mubr.bf16.vlgmr.msra.gmra.mrb[8].mxu0 %v395_v59 }
 0x4ae   :  { %v501_v61 = vpop.f32.mrb[8].mxu0 }
 0x4af   :  { %v502_v62 = vadd.f32 %v543_v60, %v501_v61  ;;  %v695_v63 = vpop.f32.mrb[9].mxu0 }
 0x4b0   :  { %v504_v0 = vpop.f32.mrb[10].mxu0 }
 0x4b1   :  { %507 = vst [vmem:[#allocation10] sm:$0xff] %v502_v62  ;;  %v696_v1 = vpop.f32.mrb[11].mxu0 }
 0x4b2   :  { %829 = shalt.err (!%p826_p8)
}
 0x4b3   :  { %s830_s6 = scalar_lea.hbm %s1047_s7, 128 }
 0x4b4   :  { %p831_p9 = scmp.ne.s32.totalorder %s1047_s7, %s830_s6  ;;  %p834_p10 = scmp.lt.u32.totalorder %s830_s6, %s1047_s7 }
 0x4b6   :  { %p836_p11 = pnand %p834_p10, %p831_p9 }
 0x4b8   :  { %839 = shalt.err (!%p836_p11)
}
 0x4b9   :  { %517 = dma.vmem_to_hbm [thread:$0]  %s515_s28, 128, %s1047_s7, [#allocation4]  }
 0x4ba   :  { %846 = dma.done.wait [#allocation4], 128  }
 0x4bb   :  { %847 = vsyncadd [#allocation4], 4294967168 }
 0x4bc   :  { %521 = vsyncpa [#allocation3], 1 }
 0x4bd   :  { %522 = vsyncpa [#allocation6], 1 }
 0x4be   :  { %523 = vsyncpa [#allocation9], 1 }
 0x4bf   :  { %524 = vsyncpa [#allocation4], 1 }

</bundles_post_ra>
